<compile_context>
chip_gen: v5e
topology: v5e:2x2
jax: 0.10.0
libtpu: 0.0.40
codegen_flags: <defaults>
</compile_context>

<pallas_src>
import jax
import jax.numpy as jnp
from jax.experimental import pallas as pl
from jax.experimental.pallas import tpu as pltpu

# ----------------------------- configuration --------------------------------
B = 2                    # batch size
IN_FEATURES = 256        # timm backbone num_features (self.in_features)
FH = FW = 4              # backbone feature-map spatial size
S = FH * FW              # flattened spatial
EMBED = 128              # config.embedding_size
NUM_CLASSES = 128        # config.num_classes (lane-dense output)


# ------------------------------ Pallas kernel --------------------------------
def cnn2d_head_kernel(fmap_ref, w_ref, b_ref, o_ref):
    """Everything downstream of the timm backbone, fused into one invocation.

    fmap_ref: [B, C, S]          f32   backbone feature map, native BCHW view
    w_ref   : [C + E, NC]        bf16  [ self.linear.weight^T / S ; self.last_linear.weight^T ]
    b_ref   : [2, NC]            f32   [ self.linear.bias ; self.last_linear.bias ]
    o_ref   : [B, NC]            f32   cosine logits
    """
    # adaptive_avg_pool2d(., (1, 1)) + .view(B, -1): the 1/S scale is folded into w1
    # on the host, so a plain spatial sum suffices (XLU lane reduce).
    pooled = jnp.sum(fmap_ref[...], axis=-1)                         # [B, C] f32

    # Static slices of the stacked weight / bias slabs (zero-cost views).
    w1 = w_ref[0:IN_FEATURES, :]                                     # [C, E]  bf16 (pre-scaled 1/S)
    w2 = w_ref[IN_FEATURES:IN_FEATURES + EMBED, :]                   # [E, NC] bf16
    b1 = b_ref[0:1, :]                                               # [1, E]  f32
    b2 = b_ref[1:2, :]                                               # [1, NC] f32

    # self.linear  (bf16 MXU matmul, f32 accumulation)
    h = jnp.dot(pooled.astype(jnp.bfloat16), w1,
                preferred_element_type=jnp.float32) + b1             # [B, E] f32

    # Swish: x * sigmoid(x); divide on the EUP slot (co-issues with the exp).
    h = h * pl.reciprocal(1.0 + jnp.exp(-h), approx=True)

    # self.last_linear -> cosine
    out = jnp.dot(h.astype(jnp.bfloat16), w2,
                  preferred_element_type=jnp.float32) + b2           # [B, NC] f32
    o_ref[...] = out.astype(o_ref.dtype)


# --------------------------- one-time weight packing --------------------------
def pack_params(params):
    """Done once (outside the per-call forward path): scale, cast and stack weights."""
    w1_scaled = (params["w1"] / float(S)).astype(jnp.bfloat16)       # fold pooling 1/S
    w2 = params["w2"].astype(jnp.bfloat16)
    return {
        "w": jnp.concatenate([w1_scaled, w2], axis=0),               # [C+E, NC] bf16
        "b": jnp.concatenate([params["b1"], params["b2"]], axis=0),  # [2, NC]   f32
    }


def cnn2d_head_forward(fmap_bchw, packed):
    """fmap_bchw: [B, C, Hf, Wf] float32 backbone feature map (channels_first)."""
    b, c, fh, fw = fmap_bchw.shape
    s = fh * fw
    # Copy-free view: merging the trailing spatial dims is a bitcast reshape (no HLO copy,
    # no extra launch). Pooling over the last axis happens inside the kernel.
    fmap_bcs = fmap_bchw.reshape(b, c, s)

    full2 = lambda i: (0, 0)
    full3 = lambda i: (0, 0, 0)

    flops = 2 * b * c * EMBED + 2 * b * EMBED * NUM_CLASSES + b * c * s
    bytes_accessed = (fmap_bcs.size * 4 + packed["w"].size * 2
                      + packed["b"].size * 4 + b * NUM_CLASSES * 4)

    out = pl.pallas_call(
        cnn2d_head_kernel,
        out_shape=jax.ShapeDtypeStruct((b, NUM_CLASSES), jnp.float32),
        grid_spec=pltpu.PrefetchScalarGridSpec(
            num_scalar_prefetch=0,
            grid=(1,),                                              # single step: no pipeline overhead
            in_specs=[
                pl.BlockSpec((b, c, s), full3),                     # feature map (whole problem)
                pl.BlockSpec((IN_FEATURES + EMBED, NUM_CLASSES), full2),  # stacked weights
                pl.BlockSpec((2, NUM_CLASSES), full2),              # stacked biases
            ],
            out_specs=pl.BlockSpec((b, NUM_CLASSES), full2),        # lane-dense (NC = 128)
        ),
        compiler_params=pltpu.CompilerParams(
            dimension_semantics=("arbitrary",)),                    # no megacore split of a 1-step grid
        cost_estimate=pl.CostEstimate(
            flops=flops, transcendentals=b * EMBED, bytes_accessed=bytes_accessed),
    )(fmap_bcs, packed["w"], packed["b"])
    return out


# ------------------------- deterministic parameter init ----------------------
def init_params(key):
    ks = jax.random.split(key, 4)
    sc = 0.05
    return {
        "w1": jax.random.normal(ks[0], (IN_FEATURES, EMBED), jnp.float32) * sc,
        "b1": jax.random.normal(ks[1], (1, EMBED), jnp.float32) * sc,
        "w2": jax.random.normal(ks[2], (EMBED, NUM_CLASSES), jnp.float32) * sc,
        "b2": jax.random.normal(ks[3], (1, NUM_CLASSES), jnp.float32) * sc,
    }


# ------------------------------- references ----------------------------------
def cnn2d_head_reference_f32(fmap_bchw, p):
    """Pure-JAX f32 reference of the PyTorch forward (post-backbone, eval mode)."""
    feat = jnp.mean(fmap_bchw, axis=(2, 3))                  # adaptive_avg_pool2d + view
    h = feat @ p["w1"] + p["b1"][0]                          # self.linear
    h = h * jax.nn.sigmoid(h)                                # Swish
    return h @ p["w2"] + p["b2"][0]                          # self.last_linear (cosine)


def cnn2d_head_reference_bf16(fmap_bchw, p):
    """Reference replicating the kernel's bf16-matmul / f32-accumulate / folded-1/S math."""
    b, c, fh, fw = fmap_bchw.shape
    s = fh * fw
    feat = jnp.sum(fmap_bchw.reshape(b, c, s), axis=-1)      # f32 spatial sum
    w1s = (p["w1"] / float(s)).astype(jnp.bfloat16)
    h = jnp.dot(feat.astype(jnp.bfloat16), w1s,
                preferred_element_type=jnp.float32) + p["b1"]
    h = h * (1.0 / (1.0 + jnp.exp(-h)))
    return jnp.dot(h.astype(jnp.bfloat16), p["w2"].astype(jnp.bfloat16),
                   preferred_element_type=jnp.float32) + p["b2"]


if __name__ == "__main__":
    key = jax.random.PRNGKey(0)
    k_param, k_fmap = jax.random.split(key, 2)

    params = init_params(k_param)
    packed = pack_params(params)      # one-time weight prep (scale + cast + stack)

    # batch['image'] would be [B, H, W, 3]; the timm backbone mapping it to a
    # [B, C, Hf, Wf] feature map is not translated (see TODO above), so we feed
    # a deterministic stand-in feature map with the shape the backbone emits.
    fmap_bchw = jax.random.normal(k_fmap, (B, IN_FEATURES, FH, FW), jnp.float32)

    out = cnn2d_head_forward(fmap_bchw, packed)
    out = jax.block_until_ready(out)
    assert out.shape == (B, NUM_CLASSES)

    ref_bf16 = cnn2d_head_reference_bf16(fmap_bchw, params)
    ref_f32 = cnn2d_head_reference_f32(fmap_bchw, params)
    assert jnp.allclose(out, ref_bf16, atol=2e-3, rtol=2e-3), "mismatch vs bf16-matched reference"
    assert jnp.allclose(out, ref_f32, atol=2e-2, rtol=2e-2), "mismatch vs f32 reference"

    print("KERNEL_OK")
</pallas_src>

<mosaic_0001>
module attributes {stable_mosaic.version = 11 : i64} {
  func.func @cnn2d_head_kernel(%arg0: i32, %arg1: memref<2x256x16xf32, #tpu.memory_space<vmem>>, %arg2: memref<384x128xbf16, #tpu.memory_space<vmem>>, %arg3: memref<2x128xf32, #tpu.memory_space<vmem>>, %arg4: memref<2x128xf32, #tpu.memory_space<vmem>>) attributes {dimension_semantics = [#tpu.dimension_semantics<arbitrary>], iteration_bounds = array<i64: 1>, scalar_prefetch = 0 : i64, scratch_operands = 0 : i64, tpu.core_type = #tpu.core_type<tc>, window_params = [{pipeline_mode = #tpu.pipeline_mode<synchronous>, transform_indices = @transform_0, window_bounds = array<i64: 2, 256, 16>}, {pipeline_mode = #tpu.pipeline_mode<synchronous>, transform_indices = @transform_1, window_bounds = array<i64: 384, 128>}, {pipeline_mode = #tpu.pipeline_mode<synchronous>, transform_indices = @transform_2, window_bounds = array<i64: 2, 128>}, {pipeline_mode = #tpu.pipeline_mode<synchronous>, transform_indices = @transform_3, window_bounds = array<i64: 2, 128>}]} {
    %c0 = arith.constant 0 : index
    %c0_0 = arith.constant 0 : index
    %c0_1 = arith.constant 0 : index
    %0 = vector.load %arg1[%c0, %c0_0, %c0_1] : memref<2x256x16xf32, #tpu.memory_space<vmem>>, vector<2x256x16xf32>
    %cst = arith.constant dense<0.000000e+00> : vector<2x256xf32>
    %1 = vector.multi_reduction <add>, %0, %cst [2] : vector<2x256x16xf32> to vector<2x256xf32>
    %c0_2 = arith.constant 0 : index
    %c0_3 = arith.constant 0 : index
    %2 = vector.load %arg2[%c0_2, %c0_3] : memref<384x128xbf16, #tpu.memory_space<vmem>>, vector<256x128xbf16>
    %c256 = arith.constant 256 : index
    %c0_4 = arith.constant 0 : index
    %3 = vector.load %arg2[%c256, %c0_4] : memref<384x128xbf16, #tpu.memory_space<vmem>>, vector<128x128xbf16>
    %c0_5 = arith.constant 0 : index
    %c0_6 = arith.constant 0 : index
    %4 = vector.load %arg3[%c0_5, %c0_6] : memref<2x128xf32, #tpu.memory_space<vmem>>, vector<1x128xf32>
    %c1 = arith.constant 1 : index
    %c0_7 = arith.constant 0 : index
    %5 = vector.load %arg3[%c1, %c0_7] : memref<2x128xf32, #tpu.memory_space<vmem>>, vector<1x128xf32>
    %6 = arith.truncf %1 : vector<2x256xf32> to vector<2x256xbf16>
    %cst_8 = arith.constant dense<0.000000e+00> : vector<2x128xf32>
    %7 = tpu.matmul %6, %2, %cst_8 {dimension_numbers = #tpu.dot_dimension_numbers<[1], [0], [0], [1], [0, 0, 1, 1], [], []>} : vector<2x256xbf16>, vector<256x128xbf16>, vector<2x128xf32> -> vector<2x128xf32>
    %8 = vector.broadcast %4 : vector<1x128xf32> to vector<2x128xf32>
    %9 = arith.addf %7, %8 : vector<2x128xf32>
    %cst_9 = arith.constant 0.000000e+00 : f32
    %10 = vector.broadcast %cst_9 : f32 to vector<2x128xf32>
    %11 = arith.subf %10, %9 : vector<2x128xf32>
    %12 = math.exp %11 : vector<2x128xf32>
    %cst_10 = arith.constant 1.000000e+00 : f32
    %13 = vector.broadcast %cst_10 : f32 to vector<2x128xf32>
    %14 = arith.addf %13, %12 : vector<2x128xf32>
    %15 = tpu.reciprocal %14 {approx = true} : vector<2x128xf32> -> vector<2x128xf32>
    %16 = arith.mulf %9, %15 : vector<2x128xf32>
    %17 = arith.truncf %16 : vector<2x128xf32> to vector<2x128xbf16>
    %cst_11 = arith.constant dense<0.000000e+00> : vector<2x128xf32>
    %18 = tpu.matmul %17, %3, %cst_11 {dimension_numbers = #tpu.dot_dimension_numbers<[1], [0], [0], [1], [0, 0, 1, 1], [], []>} : vector<2x128xbf16>, vector<128x128xbf16>, vector<2x128xf32> -> vector<2x128xf32>
    %19 = vector.broadcast %5 : vector<1x128xf32> to vector<2x128xf32>
    %20 = arith.addf %18, %19 : vector<2x128xf32>
    %c0_12 = arith.constant 0 : index
    %c0_13 = arith.constant 0 : index
    %21 = vector.load %arg4[%c0_12, %c0_13] : memref<2x128xf32, #tpu.memory_space<vmem>>, vector<2x128xf32>
    tpu.vector_store %arg4[%c0_12, %c0_13], %20 {strides = array<i32>} : memref<2x128xf32, #tpu.memory_space<vmem>>, vector<2x128xf32>,
    return
  }
  func.func @transform_0(%arg0: i32) -> (i32, i32, i32) {
    %c0_i32 = arith.constant 0 : i32
    %c0_i32_0 = arith.constant 0 : i32
    %c0_i32_1 = arith.constant 0 : i32
    %c0_i32_2 = arith.constant 0 : i32
    return %c0_i32, %c0_i32_0, %c0_i32_1 : i32, i32, i32
  }
  func.func @transform_1(%arg0: i32) -> (i32, i32) {
    %c0_i32 = arith.constant 0 : i32
    %c0_i32_0 = arith.constant 0 : i32
    %c0_i32_1 = arith.constant 0 : i32
    return %c0_i32, %c0_i32_0 : i32, i32
  }
  func.func @transform_2(%arg0: i32) -> (i32, i32) {
    %c0_i32 = arith.constant 0 : i32
    %c0_i32_0 = arith.constant 0 : i32
    %c0_i32_1 = arith.constant 0 : i32
    return %c0_i32, %c0_i32_0 : i32, i32
  }
  func.func @transform_3(%arg0: i32) -> (i32, i32) {
    %c0_i32 = arith.constant 0 : i32
    %c0_i32_0 = arith.constant 0 : i32
    %c0_i32_1 = arith.constant 0 : i32
    return %c0_i32, %c0_i32_0 : i32, i32
  }
}

</mosaic_0001>

<bundles_post_ra>
// kernel: tpu_custom_call.1
= control target key start
LH: loop header
LB: loop body
LE: loop exit
PB: predicated region body
PF: predicated region fallthrough
CT: control target
= control target key end

     0   :  { %vm79_vm0 = vcmask 130048   ;;  %s1549_s0 = inlined_call_operand.vmem [shape: f32[2,256,16], index: 0, kind: input, shape index: {}]   ;;  %s1550_s1 = inlined_call_operand.vmem [shape: bf16[384,128], index: 1, kind: input, shape index: {}]   ;;  %s1551_s2 = inlined_call_operand.vmem [shape: f32[2,128], index: 2, kind: input, shape index: {}]   ;;  %s1552_s3 = inlined_call_operand.hbm [shape: f32[2,128], index: 3, kind: output, shape index: {}]  }
   0x1   :  { %v47_v0 = vld [vmem:[%s1549_s0 + $0x100] sm:$0xff]  ;;  %v17_v1 = vld [vmem:[%s1549_s0 + $0x10] sm:$0xff]  ;;  %v48_v6 = vld [vmem:[%s1549_s0 + $0x108] sm:$0xff] }
   0x2   :  { %v15_v2 = vld [vmem:[%s1549_s0] sm:$0xff]  ;;  %v176_v3 = vsel %vm79_vm0, %v47_v0, 0.0  ;;  %v86_v4 = vsel %vm79_vm0, %v17_v1, 0.0  ;;  %v18_v7 = vld [vmem:[%s1549_s0 + $0x18] sm:$0xff]  ;;  %v16_v8 = vld [vmem:[%s1549_s0 + $0x8] sm:$0xff] }
   0x3   :  { %v80_v5 = vsel %vm79_vm0, %v15_v2, 0.0  ;;  %177 = vadd.xlane.f32.xlu1 %v176_v3  ;;  %87 = vadd.xlane.f32.xlu2 %v86_v4 }
   0x4   :  { %81 = vadd.xlane.f32.xlu0 %v80_v5 }
   0x5   :  { %8 = vsyncpa [#allocation3], 0  ;;  %v179_v9 = vsel %vm79_vm0, %v48_v6, 0.0  ;;  %v89_v10 = vsel %vm79_vm0, %v18_v7, 0.0  ;;  %v83_v11 = vsel %vm79_vm0, %v16_v8, 0.0  ;;  %v50_v12 = vld [vmem:[%s1549_s0 + $0x118] sm:$0xff] }
   0x6   :  { %v31_v13 = vld [vmem:[%s1549_s0 + $0x80] sm:$0xff]  ;;  %v49_v14 = vld [vmem:[%s1549_s0 + $0x110] sm:$0xff]  ;;  %v185_v15 = vsel %vm79_vm0, %v50_v12, 0.0  ;;  %v64_v19 = vld [vmem:[%s1549_s0 + $0x188] sm:$0xff]  ;;  %vm456_vm1 = vcmask 130112   ;;  %vm460_vm2 = vcmask 195712  }
   0x7   :  { %v128_v16 = vsel %vm79_vm0, %v31_v13, 0.0  ;;  %v182_v17 = vsel %vm79_vm0, %v49_v14, 0.0  ;;  %v63_v18 = vld [vmem:[%s1549_s0 + $0x180] sm:$0xff]  ;;  %v32_v20 = vld [vmem:[%s1549_s0 + $0x88] sm:$0xff]  ;;  %v227_v22 = vsel %vm79_vm0, %v64_v19, 0.0  ;;  %v33_v25 = vld [vmem:[%s1549_s0 + $0x90] sm:$0xff] }
   0x8   :  { %v224_v21 = vsel %vm79_vm0, %v63_v18, 0.0  ;;  %v131_v23 = vsel %vm79_vm0, %v32_v20, 0.0  ;;  %v20_v24 = vld [vmem:[%s1549_s0 + $0x28] sm:$0xff]  ;;  %v19_v26 = vld [vmem:[%s1549_s0 + $0x20] sm:$0xff]  ;;  %v134_v28 = vsel %vm79_vm0, %v33_v25, 0.0  ;;  %v34_v32 = vld [vmem:[%s1549_s0 + $0x98] sm:$0xff] }
   0x9   :  { %v95_v27 = vsel %vm79_vm0, %v20_v24, 0.0  ;;  %v92_v29 = vsel %vm79_vm0, %v19_v26, 0.0  ;;  %v51_v30 = vld [vmem:[%s1549_s0 + $0x120] sm:$0xff]  ;;  %v52_v31 = vld [vmem:[%s1549_s0 + $0x128] sm:$0xff]  ;;  %v137_v35 = vsel %vm79_vm0, %v34_v32, 0.0  ;;  %v66_v36 = vld [vmem:[%s1549_s0 + $0x198] sm:$0xff]  ;;  %v451_v32 = vlaneseq }
   0xa   :  { %v188_v33 = vsel %vm79_vm0, %v51_v30, 0.0  ;;  %v191_v34 = vsel %vm79_vm0, %v52_v31, 0.0  ;;  %v21_v37 = vld [vmem:[%s1549_s0 + $0x30] sm:$0xff]  ;;  %v233_v39 = vsel %vm79_vm0, %v66_v36, 0.0  ;;  %v35_v42 = vld [vmem:[%s1549_s0 + $0xa0] sm:$0xff]  ;;  %v36_v43 = vld [vmem:[%s1549_s0 + $0xa8] sm:$0xff] }
   0xb   :  { %180 = vadd.xlane.f32.xlu1 %v179_v9  ;;  %90 = vadd.xlane.f32.xlu2 %v89_v10  ;;  %v65_v38 = vld [vmem:[%s1549_s0 + $0x190] sm:$0xff]  ;;  %v98_v40 = vsel %vm79_vm0, %v21_v37, 0.0  ;;  %v22_v44 = vld [vmem:[%s1549_s0 + $0x38] sm:$0xff]  ;;  %v140_v45 = vsel %vm79_vm0, %v35_v42, 0.0  ;;  %v143_v46 = vsel %vm79_vm0, %v36_v43, 0.0  ;;  %v67_v49 = vld [vmem:[%s1549_s0 + $0x1a0] sm:$0xff] }
   0xc   :  { %84 = vadd.xlane.f32.xlu0 %v83_v11  ;;  %v230_v41 = vsel %vm79_vm0, %v65_v38, 0.0  ;;  %v101_v47 = vsel %vm79_vm0, %v22_v44, 0.0  ;;  %v54_v48 = vld [vmem:[%s1549_s0 + $0x138] sm:$0xff]  ;;  %v53_v50 = vld [vmem:[%s1549_s0 + $0x130] sm:$0xff]  ;;  %v236_v52 = vsel %vm79_vm0, %v67_v49, 0.0  ;;  %v23_v54 = vld [vmem:[%s1549_s0 + $0x40] sm:$0xff] }
   0xd   :  { %v197_v51 = vsel %vm79_vm0, %v54_v48, 0.0  ;;  %v194_v53 = vsel %vm79_vm0, %v53_v50, 0.0  ;;  %v24_v55 = vld [vmem:[%s1549_s0 + $0x48] sm:$0xff]  ;;  %v104_v57 = vsel %vm79_vm0, %v23_v54, 0.0  ;;  %v38_v60 = vld [vmem:[%s1549_s0 + $0xb8] sm:$0xff]  ;;  %v55_v61 = vld [vmem:[%s1549_s0 + $0x140] sm:$0xff] }
   0xe   :  { %v68_v56 = vld [vmem:[%s1549_s0 + $0x1a8] sm:$0xff]  ;;  %v107_v58 = vsel %vm79_vm0, %v24_v55, 0.0  ;;  %v37_v62 = vld [vmem:[%s1549_s0 + $0xb0] sm:$0xff]  ;;  %v149_v63 = vsel %vm79_vm0, %v38_v60, 0.0  ;;  %v200_v0 = vsel %vm79_vm0, %v55_v61, 0.0  ;;  %v70_v3 = vld [vmem:[%s1549_s0 + $0x1b8] sm:$0xff] }
   0xf   :  { %v239_v59 = vsel %vm79_vm0, %v68_v56, 0.0  ;;  %v146_v1 = vsel %vm79_vm0, %v37_v62, 0.0  ;;  %v69_v2 = vld [vmem:[%s1549_s0 + $0x1b0] sm:$0xff]  ;;  %v56_v4 = vld [vmem:[%s1549_s0 + $0x148] sm:$0xff]  ;;  %v245_v6 = vsel %vm79_vm0, %v70_v3, 0.0  ;;  %v26_v8 = vld [vmem:[%s1549_s0 + $0x58] sm:$0xff] }
  0x10   :  { %v242_v5 = vsel %vm79_vm0, %v69_v2, 0.0  ;;  %v203_v7 = vsel %vm79_vm0, %v56_v4, 0.0  ;;  %v39_v9 = vld [vmem:[%s1549_s0 + $0xc0] sm:$0xff]  ;;  %v25_v10 = vld [vmem:[%s1549_s0 + $0x50] sm:$0xff]  ;;  %v113_v11 = vsel %vm79_vm0, %v26_v8, 0.0  ;;  %v72_v20 = vld [vmem:[%s1549_s0 + $0x1c8] sm:$0xff] }
  0x11   :  { %v152_v12 = vsel %vm79_vm0, %v39_v9, 0.0  ;;  %v110_v13 = vsel %vm79_vm0, %v25_v10, 0.0  ;;  %v57_v14 = vld [vmem:[%s1549_s0 + $0x150] sm:$0xff]  ;;  %v28_v30 = vld [vmem:[%s1549_s0 + $0x68] sm:$0xff]  ;;  %v1188_v36 = vand.u32 127, %v451_v32  ;;  %vm464_vm3 = vcmask 261312  }
  0x12   :  { %v41_v26 = vld [vmem:[%s1549_s0 + $0xd0] sm:$0xff]  ;;  %v60_v37 = vld [vmem:[%s1549_s0 + $0x168] sm:$0xff]  ;;  %v30_v2 = vld [vmem:[%s1549_s0 + $0x78] sm:$0xff]  ;;  %vm468_vm4 = vcmask 326912   ;;  %vm472_vm5 = vcmask 392512   ;;  %vm476_vm6 = vcmask 458112  }
  0x13   :  { %186 = vadd.xlane.f32.xlu1 %v185_v15  ;;  %129 = vadd.xlane.f32.xlu2 %v128_v16  ;;  %v58_v15 = vld [vmem:[%s1549_s0 + $0x158] sm:$0xff]  ;;  %v40_v16 = vld [vmem:[%s1549_s0 + $0xc8] sm:$0xff]  ;;  %v1200_v43 = vadd.s32 4294967280, %v1188_v36  ;;  %v215_v48 = vsel %vm79_vm0, %v60_v37, 0.0  ;;  %v29_v61 = vld [vmem:[%s1549_s0 + $0x70] sm:$0xff]  ;;  %vm480_vm7 = vcmask 523712  }
  0x14   :  { %183 = vadd.xlane.f32.xlu0 %v182_v17  ;;  %v206_v17 = vsel %vm79_vm0, %v57_v14, 0.0  ;;  %v209_v18 = vsel %vm79_vm0, %v58_v15, 0.0  ;;  %v155_v19 = vsel %vm79_vm0, %v40_v16, 0.0  ;;  %v74_v3 = vld [vmem:[%s1549_s0 + $0x1d8] sm:$0xff]  ;;  %vm484_vm8 = vcmask 589312   ;;  %s975_s27 = smov [#allocation2]  }
  0x15   :  { %vm488_vm9 = vcmask 654912   ;;  %vm492_vm10 = vcmask 720512   ;;  %vm496_vm11 = vcmask 786112   ;;  %vm500_vm12 = vcmask 851712   ;;  %s811_s28 = sshll.u32 %s975_s27, 4  ;;  %s813_s4 = sshll.u32 %s1552_s3, 4  ;;  %s812_s28 = int_to_ptr.vmem [resolvable:$true] %s811_s28  ;;  %s814_s4 = int_to_ptr.hbm [resolvable:$true] %s813_s4 }
  0x16   :  { %vm504_vm13 = vcmask 917312   ;;  %vm508_vm14 = vcmask 982912   ;;  %vm512_vm15 = vcmask 1048512  }
  0x1b   :  { %225 = vadd.xlane.f32.xlu1 %v224_v21  ;;  %228 = vadd.xlane.f32.xlu2 %v227_v22  ;;  %v27_v21 = vld [vmem:[%s1549_s0 + $0x60] sm:$0xff] }
  0x1c   :  { %132 = vadd.xlane.f32.xlu0 %v131_v23  ;;  %v71_v22 = vld [vmem:[%s1549_s0 + $0x1c0] sm:$0xff]  ;;  %v251_v23 = vsel %vm79_vm0, %v72_v20, 0.0  ;;  %v116_v24 = vsel %vm79_vm0, %v27_v21, 0.0 }
  0x1d   :  { %v248_v25 = vsel %vm79_vm0, %v71_v22, 0.0  ;;  %v61_v22 = vld [vmem:[%s1549_s0 + $0x170] sm:$0xff] }
  0x23   :  { %96 = vadd.xlane.f32.xlu1 %v95_v27  ;;  %135 = vadd.xlane.f32.xlu2 %v134_v28  ;;  %v42_v27 = vld [vmem:[%s1549_s0 + $0xd8] sm:$0xff] }
  0x24   :  { %93 = vadd.xlane.f32.xlu0 %v92_v29 }
  0x2b   :  { %189 = vadd.xlane.f32.xlu1 %v188_v33  ;;  %192 = vadd.xlane.f32.xlu2 %v191_v34  ;;  %v158_v33 = vsel %vm79_vm0, %v41_v26, 0.0  ;;  %v161_v34 = vsel %vm79_vm0, %v42_v27, 0.0 }
  0x2c   :  { %138 = vadd.xlane.f32.xlu0 %v137_v35  ;;  %v119_v35 = vsel %vm79_vm0, %v28_v30, 0.0 }
  0x33   :  { %234 = vadd.xlane.f32.xlu1 %v233_v39  ;;  %99 = vadd.xlane.f32.xlu2 %v98_v40  ;;  %v73_v40 = vld [vmem:[%s1549_s0 + $0x1d0] sm:$0xff] }
  0x34   :  { %231 = vadd.xlane.f32.xlu0 %v230_v41  ;;  %v59_v41 = vld [vmem:[%s1549_s0 + $0x160] sm:$0xff]  ;;  %v254_v50 = vsel %vm79_vm0, %v73_v40, 0.0 }
  0x3b   :  { %141 = vadd.xlane.f32.xlu1 %v140_v45  ;;  %144 = vadd.xlane.f32.xlu2 %v143_v46  ;;  %v1203_v46 = vadd.s32 4294967288, %v1188_v36 }
  0x3c   :  { %102 = vadd.xlane.f32.xlu0 %v101_v47 }
  0x43   :  { %198 = vadd.xlane.f32.xlu1 %v197_v51  ;;  %237 = vadd.xlane.f32.xlu2 %v236_v52  ;;  %v212_v51 = vsel %vm79_vm0, %v59_v41, 0.0  ;;  %v1209_v52 = vadd.s32 4294967272, %v1188_v36 }
  0x44   :  { %195 = vadd.xlane.f32.xlu0 %v194_v53 }
  0x4b   :  { %105 = vadd.xlane.f32.xlu1 %v104_v57  ;;  %108 = vadd.xlane.f32.xlu2 %v107_v58 }
  0x4c   :  { %240 = vadd.xlane.f32.xlu0 %v239_v59 }
  0x53   :  { %150 = vadd.xlane.f32.xlu1 %v149_v63  ;;  %201 = vadd.xlane.f32.xlu2 %v200_v0 }
  0x54   :  { %147 = vadd.xlane.f32.xlu0 %v146_v1 }
  0x5b   :  { %243 = vadd.xlane.f32.xlu1 %v242_v5  ;;  %246 = vadd.xlane.f32.xlu2 %v245_v6 }
  0x5c   :  { %204 = vadd.xlane.f32.xlu0 %v203_v7  ;;  %v122_v7 = vsel %vm79_vm0, %v29_v61, 0.0 }
  0x63   :  { %114 = vadd.xlane.f32.xlu1 %v113_v11  ;;  %153 = vadd.xlane.f32.xlu2 %v152_v12  ;;  %v125_v11 = vsel %vm79_vm0, %v30_v2, 0.0  ;;  %v257_v12 = vsel %vm79_vm0, %v74_v3, 0.0 }
  0x64   :  { %111 = vadd.xlane.f32.xlu0 %v110_v13 }
  0x6b   :  { %207 = vadd.xlane.f32.xlu1 %v206_v17  ;;  %210 = vadd.xlane.f32.xlu2 %v209_v18  ;;  %v44_v18 = vld [vmem:[%s1549_s0 + $0xe8] sm:$0xff] }
  0x6c   :  { %156 = vadd.xlane.f32.xlu0 %v155_v19 }
  0x73   :  { %252 = vadd.xlane.f32.xlu1 %v251_v23  ;;  %117 = vadd.xlane.f32.xlu2 %v116_v24  ;;  %v43_v23 = vld [vmem:[%s1549_s0 + $0xe0] sm:$0xff] }
  0x74   :  { %249 = vadd.xlane.f32.xlu0 %v248_v25  ;;  %v164_v30 = vsel %vm79_vm0, %v43_v23, 0.0 }
  0x76   :  { %v178_v28 = vpop.xlane.xlu1 %177  ;;  %v88_v29 = vpop.xlane.xlu2 %87 }
  0x77   :  { %v82_v31 = vpop.xlane.xlu0 %81 }
  0x7b   :  { %159 = vadd.xlane.f32.xlu1 %v158_v33  ;;  %162 = vadd.xlane.f32.xlu2 %v161_v34  ;;  %v76_v34 = vld [vmem:[%s1549_s0 + $0x1e8] sm:$0xff] }
  0x7c   :  { %120 = vadd.xlane.f32.xlu0 %v119_v35  ;;  %v62_v35 = vld [vmem:[%s1549_s0 + $0x178] sm:$0xff] }
  0x7e   :  { %v181_v38 = vpop.xlane.xlu1 %180  ;;  %v91_v39 = vpop.xlane.xlu2 %90 }
  0x7f   :  { %v338_v42 = vpack.c.bf16 %v181_v38, %v178_v28  ;;  %v323_v44 = vpack.c.bf16 %v91_v39, %v88_v29  ;;  %v85_v45 = vpop.xlane.xlu0 %84  ;;  %v167_v28 = vsel %vm79_vm0, %v44_v18, 0.0  ;;  %v218_v29 = vsel %vm79_vm0, %v61_v22, 0.0 }
  0x80   :  { %v322_v47 = vpack.c.bf16 %v85_v45, %v82_v31  ;;  %v75_v31 = vld [vmem:[%s1549_s0 + $0x1e0] sm:$0xff]  ;;  %v1263_v38 = vadd.s32 4294967264, %v1188_v36  ;;  %v1266_v39 = vadd.s32 4294967256, %v1188_v36 }
  0x81   :  { %v389_v49 = vunpack.c.l.b16 %v323_v44  ;;  %v390_v53 = vunpack.c.h.b16 %v323_v44  ;;  %v419_v59 = vunpack.c.l.b16 %v338_v42  ;;  %v420_v60 = vunpack.c.h.b16 %v338_v42 }
  0x82   :  { %v387_v54 = vunpack.c.l.b16 %v322_v47  ;;  %v388_v55 = vunpack.c.h.b16 %v322_v47  ;;  %v260_v41 = vsel %vm79_vm0, %v75_v31, 0.0  ;;  %v263_v42 = vsel %vm79_vm0, %v76_v34, 0.0 }
  0x83   :  { %v459_v56 = vperm.slane %v389_v49, %v1200_v43  ;;  %216 = vadd.xlane.f32.xlu1 %v215_v48  ;;  %255 = vadd.xlane.f32.xlu2 %v254_v50  ;;  %v463_v62 = vperm.slane %v390_v53, %v1209_v52  ;;  %v545_v9 = vperm.slane %v419_v59, %v1188_v36  ;;  %v221_v44 = vsel %vm79_vm0, %v62_v35, 0.0  ;;  %v46_v53 = vld [vmem:[%s1549_s0 + $0xf8] sm:$0xff] }
  0x84   :  { %v453_v57 = vperm.slane %v387_v54, %v1188_v36  ;;  %v455_v58 = vperm.slane %v388_v55, %v1203_v46  ;;  %213 = vadd.xlane.f32.xlu0 %v212_v51  ;;  %v546_v10 = vperm.slane %v420_v60, %v1203_v46  ;;  %v45_v54 = vld [vmem:[%s1549_s0 + $0xf0] sm:$0xff] }
  0x85   :  { %v77_v55 = vld [vmem:[%s1549_s0 + $0x1f0] sm:$0xff] }
  0x86   :  { %v457_v63 = vsel %vm456_vm1, %v455_v58, %v453_v57  ;;  %v187_v0 = vpop.xlane.xlu1 %186  ;;  %v130_v1 = vpop.xlane.xlu2 %129  ;;  %v547_v17 = vsel %vm456_vm1, %v546_v10, %v545_v9 }
  0x87   :  { %v461_v4 = vsel %vm460_vm2, %v459_v56, %v457_v63  ;;  %v184_v5 = vpop.xlane.xlu0 %183  ;;  %v173_v63 = vsel %vm79_vm0, %v46_v53, 0.0 }
  0x88   :  { %v339_v6 = vpack.c.bf16 %v187_v0, %v184_v5  ;;  %v465_v8 = vsel %vm464_vm3, %v463_v62, %v461_v4  ;;  %v170_v0 = vsel %vm79_vm0, %v45_v54, 0.0 }
  0x8a   :  { %v421_v13 = vunpack.c.l.b16 %v339_v6  ;;  %v422_v14 = vunpack.c.h.b16 %v339_v6 }
  0x8b   :  { %123 = vadd.xlane.f32.xlu1 %v122_v7  ;;  %126 = vadd.xlane.f32.xlu2 %v125_v11 }
  0x8c   :  { %v548_v15 = vperm.slane %v421_v13, %v1200_v43  ;;  %v550_v16 = vperm.slane %v422_v14, %v1209_v52  ;;  %258 = vadd.xlane.f32.xlu0 %v257_v12 }
  0x8e   :  { %v549_v19 = vsel %vm460_vm2, %v548_v15, %v547_v17  ;;  %v226_v20 = vpop.xlane.xlu1 %225  ;;  %v229_v21 = vpop.xlane.xlu2 %228 }
  0x8f   :  { %v1246_v24 = vsel %vm464_vm3, %v550_v16, %v549_v19  ;;  %v1248_v25 = vpack.c.bf16 %v229_v21, %v226_v20  ;;  %v133_v26 = vpop.xlane.xlu0 %132  ;;  %v78_v20 = vld [vmem:[%s1549_s0 + $0x1f8] sm:$0xff] }
  0x90   :  { %v330_v27 = vpack.c.bf16 %v133_v26, %v130_v1  ;;  %v266_v1 = vsel %vm79_vm0, %v77_v55, 0.0 }
  0x91   :  { %v435_v12 = vunpack.c.l.b16 %v1248_v25  ;;  %v436_v13 = vunpack.c.h.b16 %v1248_v25 }
  0x92   :  { %v403_v50 = vunpack.c.l.b16 %v330_v27  ;;  %v404_v51 = vunpack.c.h.b16 %v330_v27 }
  0x93   :  { %168 = vadd.xlane.f32.xlu1 %v167_v28  ;;  %219 = vadd.xlane.f32.xlu2 %v218_v29  ;;  %v576_v25 = vperm.slane %v435_v12, %v1188_v36  ;;  %v577_v26 = vperm.slane %v436_v13, %v1203_v46 }
  0x94   :  { %165 = vadd.xlane.f32.xlu0 %v164_v30  ;;  %v514_v2 = vperm.slane %v403_v50, %v1188_v36  ;;  %v515_v3 = vperm.slane %v404_v51, %v1203_v46  ;;  %v1315_v46 = vadd.s32 4294967248, %v1188_v36 }
  0x95   :  { %v578_v31 = vsel %vm456_vm1, %v577_v26, %v576_v25 }
  0x96   :  { %v97_v32 = vpop.xlane.xlu1 %96  ;;  %v136_v33 = vpop.xlane.xlu2 %135  ;;  %v516_v14 = vsel %vm456_vm1, %v515_v3, %v514_v2 }
  0x97   :  { %v94_v37 = vpop.xlane.xlu0 %93 }
  0x98   :  { %v324_v40 = vpack.c.bf16 %v97_v32, %v94_v37 }
  0x9a   :  { %v391_v45 = vunpack.c.l.b16 %v324_v40  ;;  %v392_v47 = vunpack.c.h.b16 %v324_v40 }
  0x9b   :  { %261 = vadd.xlane.f32.xlu1 %v260_v41  ;;  %264 = vadd.xlane.f32.xlu2 %v263_v42  ;;  %v1318_v41 = vadd.s32 4294967240, %v1188_v36 }
  0x9c   :  { %v467_v48 = vperm.slane %v391_v45, %v1263_v38  ;;  %v471_v49 = vperm.slane %v392_v47, %v1266_v39  ;;  %222 = vadd.xlane.f32.xlu0 %v221_v44 }
  0x9e   :  { %v469_v56 = vsel %vm468_vm4, %v467_v48, %v465_v8  ;;  %v190_v57 = vpop.xlane.xlu1 %189  ;;  %v193_v58 = vpop.xlane.xlu2 %192 }
  0x9f   :  { %v1284_v59 = vsel %vm472_vm5, %v471_v49, %v469_v56  ;;  %v340_v60 = vpack.c.bf16 %v193_v58, %v190_v57  ;;  %v139_v61 = vpop.xlane.xlu0 %138 }
  0xa0   :  { %v331_v62 = vpack.c.bf16 %v139_v61, %v136_v33 }
  0xa1   :  { %v423_v4 = vunpack.c.l.b16 %v340_v60  ;;  %v424_v5 = vunpack.c.h.b16 %v340_v60 }
  0xa2   :  { %v405_v6 = vunpack.c.l.b16 %v331_v62  ;;  %v406_v7 = vunpack.c.h.b16 %v331_v62 }
  0xa3   :  { %v552_v8 = vperm.slane %v423_v4, %v1263_v38  ;;  %v554_v9 = vperm.slane %v424_v5, %v1266_v39  ;;  %174 = vadd.xlane.f32.xlu1 %v173_v63  ;;  %267 = vadd.xlane.f32.xlu2 %v266_v1  ;;  %v1339_v5 = vadd.s32 4294967224, %v1188_v36 }
  0xa4   :  { %v517_v10 = vperm.slane %v405_v6, %v1200_v43  ;;  %v519_v11 = vperm.slane %v406_v7, %v1209_v52  ;;  %171 = vadd.xlane.f32.xlu0 %v170_v0 }
  0xa5   :  { %v553_v15 = vsel %vm468_vm4, %v552_v8, %v1246_v24  ;;  %v269_v24 = vsel %vm79_vm0, %v78_v20, 0.0  ;;  %vm607_vm0 = vcmask 1041409  }
  0xa6   :  { %v555_v16 = vsel %vm472_vm5, %v554_v9, %v553_v15  ;;  %v518_v17 = vsel %vm460_vm2, %v517_v10, %v516_v14  ;;  %v235_v18 = vpop.xlane.xlu1 %234  ;;  %v100_v19 = vpop.xlane.xlu2 %99 }
  0xa7   :  { %v520_v21 = vsel %vm464_vm3, %v519_v11, %v518_v17  ;;  %v232_v22 = vpop.xlane.xlu0 %231 }
  0xa8   :  { %v347_v23 = vpack.c.bf16 %v235_v18, %v232_v22 }
  0xaa   :  { %v437_v27 = vunpack.c.l.b16 %v347_v23  ;;  %v438_v28 = vunpack.c.h.b16 %v347_v23 }
  0xac   :  { %v579_v29 = vperm.slane %v437_v27, %v1200_v43  ;;  %v581_v30 = vperm.slane %v438_v28, %v1209_v52  ;;  %270 = vadd.xlane.f32.xlu0 %v269_v24 }
  0xae   :  { %v580_v32 = vsel %vm460_vm2, %v579_v29, %v578_v31  ;;  %v142_v33 = vpop.xlane.xlu1 %141  ;;  %v145_v34 = vpop.xlane.xlu2 %144 }
  0xaf   :  { %v582_v35 = vsel %vm464_vm3, %v581_v30, %v580_v32  ;;  %v332_v37 = vpack.c.bf16 %v145_v34, %v142_v33  ;;  %v103_v40 = vpop.xlane.xlu0 %102 }
  0xb0   :  { %v325_v43 = vpack.c.bf16 %v103_v40, %v100_v19 }
  0xb1   :  { %v407_v42 = vunpack.c.l.b16 %v332_v37  ;;  %v408_v52 = vunpack.c.h.b16 %v332_v37 }
  0xb2   :  { %v393_v44 = vunpack.c.l.b16 %v325_v43  ;;  %v394_v45 = vunpack.c.h.b16 %v325_v43 }
  0xb3   :  { %v521_v47 = vperm.slane %v407_v42, %v1263_v38  ;;  %v523_v48 = vperm.slane %v408_v52, %v1266_v39 }
  0xb4   :  { %v475_v49 = vperm.slane %v393_v44, %v1315_v46  ;;  %v479_v50 = vperm.slane %v394_v45, %v1318_v41  ;;  %v925_v45 = vld [vmem:[%s1550_s1 + $0x38] sm:$0xff] }
  0xb5   :  { %v522_v51 = vsel %vm468_vm4, %v521_v47, %v520_v21  ;;  %710 = vmatpush.bf16.msra.mxu0 %v925_v45 }
  0xb6   :  { %v524_v53 = vsel %vm472_vm5, %v523_v48, %v522_v51  ;;  %v477_v54 = vsel %vm476_vm6, %v475_v49, %v1284_v59  ;;  %v199_v55 = vpop.xlane.xlu1 %198  ;;  %v238_v56 = vpop.xlane.xlu2 %237  ;;  %v1336_v59 = vadd.s32 4294967232, %v1188_v36  ;;  %v923_v49 = vld [vmem:[%s1550_s1 + $0x28] sm:$0xff] }
  0xb7   :  { %v481_v57 = vsel %vm480_vm7, %v479_v50, %v477_v54  ;;  %v196_v58 = vpop.xlane.xlu0 %195 }
  0xb8   :  { %v341_v60 = vpack.c.bf16 %v199_v55, %v196_v58  ;;  %v921_v55 = vld [vmem:[%s1550_s1 + $0x18] sm:$0xff] }
  0xba   :  { %v425_v61 = vunpack.c.l.b16 %v341_v60  ;;  %v426_v62 = vunpack.c.h.b16 %v341_v60  ;;  %v920_v60 = vld [vmem:[%s1550_s1 + $0x10] sm:$0xff] }
  0xbc   :  { %v556_v63 = vperm.slane %v425_v61, %v1315_v46  ;;  %v558_v0 = vperm.slane %v426_v62, %v1318_v41  ;;  %v932_v61 = vld [vmem:[%s1550_s1 + $0x70] sm:$0xff] }
  0xbe   :  { %v557_v1 = vsel %vm476_vm6, %v556_v63, %v555_v16  ;;  %v106_v2 = vpop.xlane.xlu1 %105  ;;  %v109_v3 = vpop.xlane.xlu2 %108  ;;  %v919_v63 = vld [vmem:[%s1550_s1 + $0x8] sm:$0xff] }
  0xbf   :  { %v1333_v4 = vsel %vm480_vm7, %v558_v0, %v557_v1  ;;  %v326_v6 = vpack.c.bf16 %v109_v3, %v106_v2  ;;  %v241_v7 = vpop.xlane.xlu0 %240  ;;  %v931_v0 = vld [vmem:[%s1550_s1 + $0x68] sm:$0xff]  ;;  %v918_v2 = vld [vmem:[%s1550_s1] sm:$0xff] }
  0xc0   :  { %v348_v8 = vpack.c.bf16 %v241_v7, %v238_v56  ;;  %v933_v56 = vld [vmem:[%s1550_s1 + $0x78] sm:$0xff]  ;;  %v930_v3 = vld [vmem:[%s1550_s1 + $0x60] sm:$0xff] }
  0xc1   :  { %v395_v9 = vunpack.c.l.b16 %v326_v6  ;;  %v396_v10 = vunpack.c.h.b16 %v326_v6  ;;  %723 = vmatpush.bf16.msra.mxu1 %v933_v56 }
  0xc2   :  { %v439_v11 = vunpack.c.l.b16 %v348_v8  ;;  %v440_v12 = vunpack.c.h.b16 %v348_v8  ;;  %v929_v8 = vld [vmem:[%s1550_s1 + $0x58] sm:$0xff] }
  0xc3   :  { %v483_v13 = vperm.slane %v395_v9, %v1336_v59  ;;  %v487_v14 = vperm.slane %v396_v10, %v1339_v5 }
  0xc4   :  { %v583_v15 = vperm.slane %v439_v11, %v1263_v38  ;;  %v585_v16 = vperm.slane %v440_v12, %v1266_v39  ;;  %v928_v11 = vld [vmem:[%s1550_s1 + $0x50] sm:$0xff] }
  0xc5   :  { %v485_v17 = vsel %vm484_vm8, %v483_v13, %v481_v57  ;;  %724 = vmatpush.bf16.msra.mxu1 %v932_v61 }
  0xc6   :  { %v1347_v18 = vsel %vm488_vm9, %v487_v14, %v485_v17  ;;  %v584_v19 = vsel %vm468_vm4, %v583_v15, %v582_v35  ;;  %v151_v20 = vpop.xlane.xlu1 %150  ;;  %v202_v21 = vpop.xlane.xlu2 %201  ;;  %v927_v17 = vld [vmem:[%s1550_s1 + $0x48] sm:$0xff] }
  0xc7   :  { %v586_v22 = vsel %vm472_vm5, %v585_v16, %v584_v19  ;;  %v148_v23 = vpop.xlane.xlu0 %147  ;;  %v1423_v19 = vadd.s32 4294967216, %v1188_v36 }
  0xc8   :  { %v333_v25 = vpack.c.bf16 %v151_v20, %v148_v23 }
  0xc9   :  { %725 = vmatpush.bf16.msra.mxu1 %v931_v0 }
  0xca   :  { %v409_v26 = vunpack.c.l.b16 %v333_v25  ;;  %v410_v24 = vunpack.c.h.b16 %v333_v25  ;;  %v1429_v25 = vadd.s32 4294967208, %v1188_v36 }
  0xcc   :  { %v525_v27 = vperm.slane %v409_v26, %v1315_v46  ;;  %v527_v38 = vperm.slane %v410_v24, %v1318_v41 }
  0xcd   :  { %726 = vmatpush.bf16.msra.mxu1 %v930_v3 }
  0xce   :  { %v526_v39 = vsel %vm476_vm6, %v525_v27, %v524_v53  ;;  %v244_v28 = vpop.xlane.xlu1 %243  ;;  %v247_v29 = vpop.xlane.xlu2 %246  ;;  %v922_v53 = vld [vmem:[%s1550_s1 + $0x20] sm:$0xff] }
  0xcf   :  { %v1355_v30 = vsel %vm480_vm7, %v527_v38, %v526_v39  ;;  %v349_v31 = vpack.c.bf16 %v247_v29, %v244_v28  ;;  %v205_v32 = vpop.xlane.xlu0 %204 }
  0xd0   :  { %v342_v9 = vpack.c.bf16 %v205_v32, %v202_v21  ;;  %v1435_v32 = vadd.s32 4294967200, %v1188_v36 }
  0xd1   :  { %v441_v33 = vunpack.c.l.b16 %v349_v31  ;;  %v442_v34 = vunpack.c.h.b16 %v349_v31  ;;  %727 = vmatpush.bf16.msra.mxu1 %v929_v8 }
  0xd2   :  { %v427_v15 = vunpack.c.l.b16 %v342_v9  ;;  %v428_v23 = vunpack.c.h.b16 %v342_v9 }
  0xd3   :  { %v587_v35 = vperm.slane %v441_v33, %v1315_v46  ;;  %v589_v37 = vperm.slane %v442_v34, %v1318_v41  ;;  %v924_v46 = vld [vmem:[%s1550_s1 + $0x30] sm:$0xff] }
  0xd4   :  { %711 = vmatpush.bf16.msra.mxu0 %v924_v46  ;;  %v560_v26 = vperm.slane %v427_v15, %v1336_v59 }
  0xd5   :  { %v588_v40 = vsel %vm476_vm6, %v587_v35, %v586_v22  ;;  %728 = vmatpush.bf16.msra.mxu1 %v928_v11  ;;  %v926_v22 = vld [vmem:[%s1550_s1 + $0x40] sm:$0xff]  ;;  %v562_v35 = vperm.slane %v428_v23, %v1339_v5 }
  0xd6   :  { %v1361_v43 = vsel %vm480_vm7, %v589_v37, %v588_v40  ;;  %v115_v42 = vpop.xlane.xlu1 %114  ;;  %v1363_v52 = vpop.xlane.xlu2 %153  ;;  %v1439_v40 = vadd.s32 4294967192, %v1188_v36 }
  0xd7   :  { %v112_v44 = vpop.xlane.xlu0 %111 }
  0xd8   :  { %712 = vmatpush.bf16.msra.mxu0 %v923_v49  ;;  %v327_v12 = vpack.c.bf16 %v115_v42, %v112_v44  ;;  %v561_v44 = vsel %vm484_vm8, %v560_v26, %v1333_v4 }
  0xd9   :  { %729 = vmatpush.bf16.msra.mxu1 %v927_v17  ;;  %v563_v4 = vsel %vm488_vm9, %v562_v35, %v561_v44 }
  0xda   :  { %v397_v20 = vunpack.c.l.b16 %v327_v12  ;;  %v398_v24 = vunpack.c.h.b16 %v327_v12 }
  0xdc   :  { %713 = vmatpush.bf16.msra.mxu0 %v922_v53  ;;  %v491_v28 = vperm.slane %v397_v20, %v1423_v19  ;;  %v495_v45 = vperm.slane %v398_v24, %v1429_v25 }
  0xdd   :  { %730 = vmatpush.bf16.msra.mxu1 %v926_v22 }
  0xde   :  { %v208_v47 = vpop.xlane.xlu1 %207  ;;  %v211_v48 = vpop.xlane.xlu2 %210 }
  0xdf   :  { %v157_v41 = vpop.xlane.xlu0 %156  ;;  %v343_v16 = vpack.c.bf16 %v211_v48, %v208_v47  ;;  %v493_v48 = vsel %vm492_vm10, %v491_v28, %v1347_v18 }
  0xe0   :  { %714 = vmatpush.bf16.msra.mxu0 %v921_v55  ;;  %v334_v31 = vpack.c.bf16 %v157_v41, %v1363_v52  ;;  %v497_v18 = vsel %vm496_vm11, %v495_v45, %v493_v48 }
  0xe1   :  { %v429_v27 = vunpack.c.l.b16 %v343_v16  ;;  %v430_v37 = vunpack.c.h.b16 %v343_v16 }
  0xe2   :  { %v411_v41 = vunpack.c.l.b16 %v334_v31 }
  0xe3   :  { %v564_v52 = vperm.slane %v429_v27, %v1423_v19  ;;  %v566_v55 = vperm.slane %v430_v37, %v1429_v25 }
  0xe4   :  { %715 = vmatpush.bf16.msra.mxu0 %v920_v60 }
  0xe5   :  { %v565_v61 = vsel %vm492_vm10, %v564_v52, %v563_v4 }
  0xe6   :  { %v1374_v50 = vpop.xlane.xlu1 %252  ;;  %v118_v51 = vpop.xlane.xlu2 %117  ;;  %v567_v11 = vsel %vm496_vm11, %v566_v55, %v565_v61 }
  0xe7   :  { %v1379_v54 = vpop.xlane.xlu0 %249 }
  0xe8   :  { %716 = vmatpush.bf16.msra.mxu0 %v919_v63  ;;  %v350_v56 = vpack.c.bf16 %v1374_v50, %v1379_v54  ;;  %v1459_v63 = vadd.s32 4294967176, %v1188_v36  ;;  %v529_v50 = vperm.slane %v411_v41, %v1336_v59 }
  0xec   :  { %717 = vmatpush.bf16.msra.mxu0 %v918_v2 }
  0xee   :  { %v1387_v57 = vpop.xlane.xlu1 %159  ;;  %v1389_v58 = vpop.xlane.xlu2 %162 }
  0xef   :  { %v121_v62 = vpop.xlane.xlu0 %120  ;;  %v335_v2 = vpack.c.bf16 %v1389_v58, %v1387_v57 }
  0xf0   :  { %v328_v21 = vpack.c.bf16 %v121_v62, %v118_v51  ;;  %v1449_v51 = vadd.s32 4294967184, %v1188_v36  ;;  %v443_v36 = vunpack.c.l.b16 %v350_v56 }
  0xf1   :  { %v413_v16 = vunpack.c.l.b16 %v335_v2 }
  0xf2   :  { %v399_v33 = vunpack.c.l.b16 %v328_v21  ;;  %v400_v46 = vunpack.c.h.b16 %v328_v21 }
  0xf3   :  { %v533_v44 = vperm.slane %v413_v16, %v1423_v19 }
  0xf4   :  { %v499_v49 = vperm.slane %v399_v33, %v1435_v32  ;;  %v503_v3 = vperm.slane %v400_v46, %v1439_v40 }
  0xf6   :  { %v217_v1 = vpop.xlane.xlu1 %216  ;;  %v1409_v6 = vpop.xlane.xlu2 %255  ;;  %v501_v54 = vsel %vm500_vm12, %v499_v49, %v497_v18 }
  0xf7   :  { %v214_v7 = vpop.xlane.xlu0 %213  ;;  %v505_v21 = vsel %vm504_vm13, %v503_v3, %v501_v54 }
  0xf8   :  { %v344_v38 = vpack.c.bf16 %v217_v1, %v214_v7  ;;  %v412_v1 = vunpack.c.h.b16 %v334_v31 }
  0xfa   :  { %v431_v47 = vunpack.c.l.b16 %v344_v38  ;;  %v432_v60 = vunpack.c.h.b16 %v344_v38  ;;  %v531_v27 = vperm.slane %v412_v1, %v1339_v5  ;;  %v444_v38 = vunpack.c.h.b16 %v350_v56 }
  0xfc   :  { %v568_v62 = vperm.slane %v431_v47, %v1435_v32  ;;  %v570_v12 = vperm.slane %v432_v60, %v1439_v40  ;;  %v593_v47 = vperm.slane %v444_v38, %v1339_v5  ;;  %v935_v38 = vld [vmem:[%s1550_s1 + $0x88] sm:$0xff] }
  0xfe   :  { %v124_v10 = vpop.xlane.xlu1 %123  ;;  %v127_v13 = vpop.xlane.xlu2 %126 }
  0xff   :  { %v1417_v14 = vpop.xlane.xlu0 %258  ;;  %v329_v34 = vpack.c.bf16 %v127_v13, %v124_v10  ;;  %v569_v13 = vsel %vm500_vm12, %v568_v62, %v567_v11 }
 0x100   :  { %v351_v57 = vpack.c.bf16 %v1417_v14, %v1409_v6  ;;  %v571_v6 = vsel %vm504_vm13, %v570_v12, %v569_v13  ;;  %v591_v14 = vperm.slane %v443_v36, %v1336_v59 }
 0x101   :  { %v401_v53 = vunpack.c.l.b16 %v329_v34  ;;  %v402_v7 = vunpack.c.h.b16 %v329_v34 }
 0x102   :  { %v445_v28 = vunpack.c.l.b16 %v351_v57  ;;  %v446_v48 = vunpack.c.h.b16 %v351_v57  ;;  %v592_v41 = vsel %vm484_vm8, %v591_v14, %v1361_v43 }
 0x103   :  { %v507_v9 = vperm.slane %v401_v53, %v1449_v51  ;;  %v511_v17 = vperm.slane %v402_v7, %v1459_v63  ;;  %v594_v5 = vsel %vm488_vm9, %v593_v47, %v592_v41 }
 0x104   :  { %v597_v61 = vperm.slane %v446_v48, %v1429_v25 }
 0x105   :  { %v509_v24 = vsel %vm508_vm14, %v507_v9, %v505_v21 }
 0x106   :  { %v169_v39 = vpop.xlane.xlu1 %168  ;;  %v220_v42 = vpop.xlane.xlu2 %219  ;;  %v513_v37 = vsel %vm512_vm15, %v511_v17, %v509_v24  ;;  %v936_v24 = vld [vmem:[%s1550_s1 + $0x90] sm:$0xff] }
 0x107   :  { %v166_v29 = vpop.xlane.xlu0 %165 }
 0x108   :  { %v336_v22 = vpack.c.bf16 %v169_v39, %v166_v29  ;;  %v530_v39 = vsel %vm484_vm8, %v529_v50, %v1355_v30  ;;  %v414_v29 = vunpack.c.h.b16 %v335_v2  ;;  %v595_v30 = vperm.slane %v445_v28, %v1423_v19  ;;  %v943_v28 = vld [vmem:[%s1551_s2] ss:$0 sm:$0xff] }
 0x109   :  { %v532_v53 = vsel %vm488_vm9, %v531_v27, %v530_v39 }
 0x10a   :  { %v415_v45 = vunpack.c.l.b16 %v336_v22  ;;  %v535_v4 = vperm.slane %v414_v29, %v1429_v25  ;;  %v416_v55 = vunpack.c.h.b16 %v336_v22  ;;  %v534_v56 = vsel %vm492_vm10, %v533_v44, %v532_v53  ;;  %v939_v22 = vld [vmem:[%s1550_s1 + $0xa8] sm:$0xff] }
 0x10b   :  { %v596_v19 = vsel %vm492_vm10, %v595_v30, %v594_v5 }
 0x10c   :  { %v537_v60 = vperm.slane %v415_v45, %v1435_v32  ;;  %v536_v1 = vsel %vm496_vm11, %v535_v4, %v534_v56  ;;  %v539_v2 = vperm.slane %v416_v55, %v1439_v40  ;;  %v598_v9 = vsel %vm496_vm11, %v597_v61, %v596_v19 }
 0x10e   :  { %v262_v0 = vpop.xlane.xlu1 %261  ;;  %v265_v20 = vpop.xlane.xlu2 %264 }
 0x10f   :  { %v223_v8 = vpop.xlane.xlu0 %222  ;;  %v352_v31 = vpack.c.bf16 %v265_v20, %v262_v0 }
 0x110   :  { %v345_v10 = vpack.c.bf16 %v223_v8, %v220_v42  ;;  %v538_v8 = vsel %vm500_vm12, %v537_v60, %v536_v1 }
 0x111   :  { %v447_v49 = vunpack.c.l.b16 %v352_v31  ;;  %v448_v62 = vunpack.c.h.b16 %v352_v31  ;;  %v540_v12 = vsel %vm504_vm13, %v539_v2, %v538_v8 }
 0x112   :  { %v433_v58 = vunpack.c.l.b16 %v345_v10  ;;  %v434_v15 = vunpack.c.h.b16 %v345_v10 }
 0x113   :  { %v599_v0 = vperm.slane %v447_v49, %v1435_v32  ;;  %v601_v25 = vperm.slane %v448_v62, %v1439_v40 }
 0x114   :  { %v572_v23 = vperm.slane %v433_v58, %v1449_v51  ;;  %v574_v26 = vperm.slane %v434_v15, %v1459_v63 }
 0x115   :  { %v600_v10 = vsel %vm500_vm12, %v599_v0, %v598_v9 }
 0x116   :  { %v175_v33 = vpop.xlane.xlu1 %174  ;;  %v573_v34 = vsel %vm508_vm14, %v572_v23, %v571_v6  ;;  %v268_v43 = vpop.xlane.xlu2 %267  ;;  %v602_v15 = vsel %vm504_vm13, %v601_v25, %v600_v10  ;;  %v938_v23 = vld [vmem:[%s1550_s1 + $0xa0] sm:$0xff] }
 0x117   :  { %v172_v35 = vpop.xlane.xlu0 %171  ;;  %v575_v42 = vsel %vm512_vm15, %v574_v26, %v573_v34  ;;  %v937_v26 = vld [vmem:[%s1550_s1 + $0x98] sm:$0xff]  ;;  %v934_v6 = vld [vmem:[%s1550_s1 + $0x80] sm:$0xff] }
 0x118   :  { %v337_v52 = vpack.c.bf16 %v175_v33, %v172_v35  ;;  %v608_v59 = vsel %vm607_vm0, %v575_v42, %v513_v37 }
 0x119   :  { %v610_v46 = vpack.c.b16 %v608_v59, %v608_v59  ;;  %v944_v59 = vld [vmem:[%s1551_s2 + $0x1] ss:$0 sm:$0xff] }
 0x11a   :  { %v417_v18 = vunpack.c.l.b16 %v337_v52  ;;  %v418_v3 = vunpack.c.h.b16 %v337_v52 }
 0x11b   :  { %718 = vmatmul.bf16.vlgmr.msra.gmra.mxu0 %v610_v46 }
 0x11c   :  { %v541_v50 = vperm.slane %v417_v18, %v1449_v51  ;;  %v543_v32 = vperm.slane %v418_v3, %v1459_v63 }
 0x11e   :  { %v542_v58 = vsel %vm508_vm14, %v541_v50, %v540_v12 }
 0x11f   :  { %v271_v7 = vpop.xlane.xlu0 %270  ;;  %v544_v40 = vsel %vm512_vm15, %v543_v32, %v542_v58 }
 0x120   :  { %v353_v54 = vpack.c.bf16 %v271_v7, %v268_v43 }
 0x122   :  { %v449_v11 = vunpack.c.l.b16 %v353_v54  ;;  %v450_v36 = vunpack.c.h.b16 %v353_v54 }
 0x124   :  { %v603_v13 = vperm.slane %v449_v11, %v1449_v51  ;;  %v605_v57 = vperm.slane %v450_v36, %v1459_v63  ;;  %v941_v51 = vld [vmem:[%s1550_s1 + $0xb8] sm:$0xff]  ;;  %v940_v63 = vld [vmem:[%s1550_s1 + $0xb0] sm:$0xff] }
 0x125   :  { %792 = vmatpush.bf16.msra.mxu2 %v941_v51 }
 0x126   :  { %v604_v16 = vsel %vm508_vm14, %v603_v13, %v602_v15 }
 0x127   :  { %v606_v17 = vsel %vm512_vm15, %v605_v57, %v604_v16 }
 0x128   :  { %v609_v20 = vsel %vm607_vm0, %v606_v17, %v544_v40 }
 0x129   :  { %v611_v21 = vpack.c.b16 %v609_v20, %v609_v20  ;;  %793 = vmatpush.bf16.msra.mxu2 %v940_v63 }
 0x12b   :  { %731 = vmatmul.bf16.vlgmr.msra.gmra.mxu1 %v611_v21 }
 0x12d   :  { %794 = vmatpush.bf16.msra.mxu2 %v939_v22 }
 0x131   :  { %795 = vmatpush.bf16.msra.mxu2 %v938_v23 }
 0x135   :  { %796 = vmatpush.bf16.msra.mxu2 %v937_v26 }
 0x139   :  { %797 = vmatpush.bf16.msra.mxu2 %v936_v24 }
 0x13d   :  { %798 = vmatpush.bf16.msra.mxu2 %v935_v38 }
 0x141   :  { %799 = vmatpush.bf16.msra.mxu2 %v934_v6 }
 0x198   :  { %v719_v27 = vpop.f32.mrf.mxu0 }
 0x199   :  { %v720_v31 = vadd.f32 %v943_v28, %v719_v27 }
 0x1a0   :  { %v721_v14 = vpop.f32.mrf.mxu0 }
 0x1a8   :  { %v732_v33 = vpop.f32.mrf.mxu1 }
 0x1a9   :  { %v733_v34 = vadd.f32 %v732_v33, %v720_v31 }
 0x1ab   :  { %v736_v39 = vsub.f32 0.0, %v733_v34 }
 0x1ad   :  { %v737_v29 = vmul.f32 1.442695, %v736_v39 }
 0x1af   :  { %945 = vpow2.f32 %v737_v29 }
 0x1b0   :  { %v734_v35 = vpop.f32.mrf.mxu1 }
 0x1b5   :  { %v946_v37 = vpop.eup %945 }
 0x1b6   :  { %v739_v42 = vadd.f32 1.0, %v946_v37 }
 0x1b8   :  { %947 = vrcp.f32 %v739_v42 }
 0x1be   :  { %v948_v44 = vpop.eup %947 }
 0x1bf   :  { %v741_v45 = vmul.f32 %v948_v44, %v733_v34 }
 0x1c1   :  { %v742_v52 = vpack.c.bf16 %v741_v45, %v741_v45 }
 0x1c3   :  { %800 = vmatmul.bf16.vlgmr.msra.gmra.mxu2 %v742_v52 }
 0x246   :  { %v801_v47 = vpop.f32.mrf.mxu2 }
 0x247   :  { %v802_v48 = vadd.f32 %v944_v59, %v801_v47 }
 0x249   :  { %805 = vst [vmem:[#allocation2] sm:$0x3] %v802_v48 }
 0x24a   :  { %816 = dma.vmem_to_hbm [thread:$0]  %s812_s28, 32, %s814_s4, [#allocation3]  }
 0x24e   :  { %v803_v46 = vpop.f32.mrf.mxu2 }
 0x24f   :  { %973 = dma.done.wait [#allocation3], 32  }
 0x250   :  { %974 = vsyncadd [#allocation3], 4294967264 }
 0x251   :  { %821 = vsyncpa [#allocation3], 1 }

</bundles_post_ra>
